<compile_context>
chip_gen: v5e
topology: v5e:2x2
jax: 0.10.0
libtpu: 0.0.40
codegen_flags: <defaults>
</compile_context>

<pallas_src>
import functools

import jax
import jax.numpy as jnp
from jax.experimental import pallas as pl
from jax.experimental.pallas import tpu as pltpu


def _round_up(x, m):
    return (x + m - 1) // m * m


def _cdiv(a, b):
    return (a + b - 1) // b


def _pick_bm(bp, s, tk, x_itemsize, bm_cap, x_bytes_budget):
    """Largest multiple-of-8 divisor of bp under the caps."""
    cap = min(bm_cap, bp)
    if bp >= 16:
        # Keep >= 2 batch grid steps so the v7x megacore can shard the
        # "parallel" axis across both TensorCores.
        cap = min(cap, bp // 2)
    # Keep the double-buffered x tile within the VMEM budget.
    per_row = s * tk * x_itemsize
    cap = min(cap, max(8, x_bytes_budget // (2 * per_row)))
    bm = 8
    c = 8
    while c <= cap:
        if bp % c == 0:
            bm = c
        c += 8
    return bm


def ehr_kernel(x_ref, mask_ref, w_emb_ref, w_mlp_ref, b_ref, o_ref, h_acc,
               *, v_total, tk):
    # x_ref:     (BM, S, TK)       native dtype, one (batch tile, V tile)
    # mask_ref:  (BM, S, 1)        f32
    # w_emb_ref: (TK, word_dim)    f32 (embedding weight, pre-transposed, V tile k)
    # w_mlp_ref: (word_dim, mem_dim) f32 (grid-invariant)
    # b_ref:     (1, mem_dim)      f32 (grid-invariant)
    # o_ref:     (BM, mem_dim)     f32 output tile (written at last k step)
    # h_acc:     (BM, word_dim)    f32 VMEM scratch, carried across the k axis
    k = pl.program_id(1)

    @pl.when(k == 0)
    def _():
        h_acc[...] = jnp.zeros_like(h_acc)

    bm, s_len, tk_blk = x_ref.shape

    # Masked sum over the sequence axis, one S-slice live at a time
    # (avoids materializing the whole (BM, S, TK) tile in f32).
    xm = jnp.zeros((bm, tk_blk), jnp.float32)
    for s in range(s_len):  # static, small S; unrolled at trace time
        xm = xm + x_ref[:, s, :].astype(jnp.float32) * mask_ref[:, s, :]

    # Tail V tile: zero out lanes past the real vocab size (the x block may
    # have read unspecified data there; w_emb rows are zero-padded as well).
    if v_total % tk != 0:
        lane = jax.lax.broadcasted_iota(jnp.int32, xm.shape, 1)
        xm = jnp.where(lane < (v_total - k * tk), xm, 0.0)

    # Partial embedding contribution for this V tile (f32 MXU accumulate).
    h_acc[...] += jnp.dot(xm, w_emb_ref[...].astype(jnp.float32),
                          preferred_element_type=jnp.float32)

    # Finalize: MLP + bias + ReLU only on the last V tile.
    @pl.when(k == pl.num_programs(1) - 1)
    def _():
        o = jnp.dot(h_acc[...], w_mlp_ref[...].astype(jnp.float32),
                    preferred_element_type=jnp.float32) + b_ref[...]
        o_ref[...] = jnp.maximum(o, 0.0).astype(o_ref.dtype)


def prepare_ehr_params(w_emb, w_mlp, b_mlp, *, tk_cap=512):
    """One-time weight prep (hoisted out of the per-call forward path).

    w_emb: (word_dim, V)        PyTorch Linear weight layout, no bias
    w_mlp: (mem_dim, word_dim)
    b_mlp: (mem_dim,)
    """
    word_dim, v = w_emb.shape
    mem_dim = w_mlp.shape[0]
    tk = v if v <= tk_cap else tk_cap          # V tile (multiple of 128 or full V)
    kp = _cdiv(v, tk) * tk
    w_emb_t = jnp.asarray(w_emb, jnp.float32).T            # (V, word_dim)
    if kp != v:
        w_emb_t = jnp.pad(w_emb_t, ((0, kp - v), (0, 0)))  # zero rows
    w_mlp_t = jnp.asarray(w_mlp, jnp.float32).T            # (word_dim, mem_dim)
    b2 = jnp.asarray(b_mlp, jnp.float32).reshape(1, mem_dim)
    return dict(w_emb_t=w_emb_t, w_mlp_t=w_mlp_t, b=b2,
                V=v, TK=tk, word_dim=word_dim, mem_dim=mem_dim)


def ehr_network_forward(x, demo, mask, params, *, bm_cap=128,
                        x_vmem_budget=24 << 20,
                        vmem_limit_bytes=48 * 1024 * 1024):
    """x: (B, S, V) any numeric dtype; demo: (B, demo_dim) unused; mask: (B, S).
    params: output of prepare_ehr_params.  Returns (B, mem_dim) float32."""
    del demo  # unused by the reference forward pass
    b_dim, s_dim, v_dim = x.shape
    assert v_dim == params["V"]
    tk = params["TK"]
    word_dim = params["word_dim"]
    mem_dim = params["mem_dim"]
    grid_k = _cdiv(v_dim, tk)

    bp = _round_up(b_dim, 8)
    bm = _pick_bm(bp, s_dim, tk, jnp.dtype(x.dtype).itemsize,
                  bm_cap, x_vmem_budget)

    # Only the (tiny) batch remainder is padded; no pad/cast pass over V/S.
    if bp != b_dim:
        x = jnp.pad(x, ((0, bp - b_dim), (0, 0), (0, 0)))
        mask = jnp.pad(jnp.asarray(mask, jnp.float32),
                       ((0, bp - b_dim), (0, 0)))
    mask3 = jnp.asarray(mask, jnp.float32).reshape(bp, s_dim, 1)

    kernel = functools.partial(ehr_kernel, v_total=v_dim, tk=tk)
    out = pl.pallas_call(
        kernel,
        out_shape=jax.ShapeDtypeStruct((bp, mem_dim), jnp.float32),
        grid=(bp // bm, grid_k),
        in_specs=[
            pl.BlockSpec((bm, s_dim, tk), lambda i, k: (i, 0, k)),
            pl.BlockSpec((bm, s_dim, 1), lambda i, k: (i, 0, 0)),
            pl.BlockSpec((tk, word_dim), lambda i, k: (k, 0)),
            pl.BlockSpec((word_dim, mem_dim), lambda i, k: (0, 0)),
            pl.BlockSpec((1, mem_dim), lambda i, k: (0, 0)),
        ],
        out_specs=pl.BlockSpec((bm, mem_dim), lambda i, k: (i, 0)),
        scratch_shapes=[pltpu.VMEM((bm, word_dim), jnp.float32)],
        compiler_params=pltpu.CompilerParams(
            dimension_semantics=("parallel", "arbitrary"),
            vmem_limit_bytes=vmem_limit_bytes),
    )(x, mask3, params["w_emb_t"], params["w_mlp_t"], params["b"])
    return out[:b_dim]


def reference_forward(x, mask, w_emb, w_mlp, b_mlp):
    h = jnp.einsum("bsv,dv->bsd", x, w_emb)
    h = jnp.sum(h * mask[..., None], axis=1)
    return jax.nn.relu(jnp.einsum("bd,md->bm", h, w_mlp) + b_mlp)


if __name__ == "__main__":
    # Small shapes consistent with the module:
    #   total_vocab_size=32, word_dim=16, mem_dim=32, demo_dim=4
    #   batch=2, seq=8
    B, S, V = 2, 8, 32
    word_dim, mem_dim, demo_dim = 16, 32, 4

    key = jax.random.PRNGKey(0)
    k_x, k_m, k_we, k_wm, k_b, k_d = jax.random.split(key, 6)

    x = jax.random.normal(k_x, (B, S, V), dtype=jnp.float32)
    mask = (jax.random.uniform(k_m, (B, S)) > 0.3).astype(jnp.float32)
    demo = jax.random.normal(k_d, (B, demo_dim), dtype=jnp.float32)

    # PyTorch Linear weight layout: (out_features, in_features).
    w_emb = jax.random.normal(k_we, (word_dim, V), dtype=jnp.float32) * 0.1
    w_mlp = jax.random.normal(k_wm, (mem_dim, word_dim), dtype=jnp.float32) * 0.1
    b_mlp = jax.random.normal(k_b, (mem_dim,), dtype=jnp.float32) * 0.1

    params = prepare_ehr_params(w_emb, w_mlp, b_mlp)   # one-time weight prep
    out = ehr_network_forward(x, demo, mask, params)
    out = jax.block_until_ready(out)

    ref = reference_forward(x, mask, w_emb, w_mlp, b_mlp)
    assert out.shape == (B, mem_dim)
    # f32 operands with MXU accumulation; tolerance covers MXU pass rounding.
    assert jnp.allclose(out, ref, atol=1e-2, rtol=1e-2), "mismatch vs reference"

    print("KERNEL_OK")
</pallas_src>

<mosaic_0001>
module attributes {stable_mosaic.version = 11 : i64} {
  func.func @ehr_kernel(%arg0: i32, %arg1: i32, %arg2: memref<8x8x32xf32, #tpu.memory_space<vmem>>, %arg3: memref<8x8x1xf32, #tpu.memory_space<vmem>>, %arg4: memref<32x16xf32, #tpu.memory_space<vmem>>, %arg5: memref<16x32xf32, #tpu.memory_space<vmem>>, %arg6: memref<1x32xf32, #tpu.memory_space<vmem>>, %arg7: memref<8x32xf32, #tpu.memory_space<vmem>>, %arg8: memref<8x16xf32, #tpu.memory_space<vmem>>) attributes {dimension_semantics = [#tpu.dimension_semantics<parallel>, #tpu.dimension_semantics<arbitrary>], iteration_bounds = array<i64: 1, 1>, scalar_prefetch = 0 : i64, scratch_operands = 1 : i64, tpu.core_type = #tpu.core_type<tc>, window_params = [{transform_indices = @transform_0, window_bounds = array<i64: 8, 8, 32>}, {transform_indices = @transform_1, window_bounds = array<i64: 8, 8, 1>}, {transform_indices = @transform_2, window_bounds = array<i64: 32, 16>}, {pipeline_mode = #tpu.pipeline_mode<synchronous>, transform_indices = @transform_3, window_bounds = array<i64: 16, 32>}, {pipeline_mode = #tpu.pipeline_mode<synchronous>, transform_indices = @transform_4, window_bounds = array<i64: 1, 32>}, {transform_indices = @transform_5, window_bounds = array<i64: 8, 32>}]} {
    %c0_i32 = arith.constant 0 : i32
    %0 = arith.cmpi eq, %arg1, %c0_i32 : i32
    %1 = arith.extui %0 : i1 to i32
    %c0_i32_0 = arith.constant 0 : i32
    %2 = arith.cmpi ne, %1, %c0_i32_0 : i32
    scf.if %2 {
      %cst_50 = arith.constant 0.000000e+00 : f32
      %68 = vector.broadcast %cst_50 : f32 to vector<8x16xf32>
      %c0_51 = arith.constant 0 : index
      %c0_52 = arith.constant 0 : index
      %69 = vector.load %arg8[%c0_51, %c0_52] : memref<8x16xf32, #tpu.memory_space<vmem>>, vector<8x16xf32>
      tpu.vector_store %arg8[%c0_51, %c0_52], %68 {strides = array<i32>} : memref<8x16xf32, #tpu.memory_space<vmem>>, vector<8x16xf32>,
    } else {
    }
    %cst = arith.constant 0.000000e+00 : f32
    %3 = vector.broadcast %cst : f32 to vector<8x32xf32>
    %c0 = arith.constant 0 : index
    %c0_1 = arith.constant 0 : index
    %c0_2 = arith.constant 0 : index
    %4 = vector.load %arg2[%c0, %c0_1, %c0_2] : memref<8x8x32xf32, #tpu.memory_space<vmem>>, vector<8x1x32xf32>
    %5 = vector.shape_cast %4 : vector<8x1x32xf32> to vector<8x32xf32>
    %c0_3 = arith.constant 0 : index
    %c0_4 = arith.constant 0 : index
    %c0_5 = arith.constant 0 : index
    %6 = vector.load %arg3[%c0_3, %c0_4, %c0_5] : memref<8x8x1xf32, #tpu.memory_space<vmem>>, vector<8x1x1xf32>
    %7 = vector.shape_cast %6 : vector<8x1x1xf32> to vector<8x1xf32>
    %8 = vector.broadcast %7 : vector<8x1xf32> to vector<8x32xf32>
    %9 = arith.mulf %5, %8 : vector<8x32xf32>
    %10 = arith.addf %3, %9 : vector<8x32xf32>
    %c0_6 = arith.constant 0 : index
    %c1 = arith.constant 1 : index
    %c0_7 = arith.constant 0 : index
    %11 = vector.load %arg2[%c0_6, %c1, %c0_7] : memref<8x8x32xf32, #tpu.memory_space<vmem>>, vector<8x1x32xf32>
    %12 = vector.shape_cast %11 : vector<8x1x32xf32> to vector<8x32xf32>
    %c0_8 = arith.constant 0 : index
    %c1_9 = arith.constant 1 : index
    %c0_10 = arith.constant 0 : index
    %13 = vector.load %arg3[%c0_8, %c1_9, %c0_10] : memref<8x8x1xf32, #tpu.memory_space<vmem>>, vector<8x1x1xf32>
    %14 = vector.shape_cast %13 : vector<8x1x1xf32> to vector<8x1xf32>
    %15 = vector.broadcast %14 : vector<8x1xf32> to vector<8x32xf32>
    %16 = arith.mulf %12, %15 : vector<8x32xf32>
    %17 = arith.addf %10, %16 : vector<8x32xf32>
    %c0_11 = arith.constant 0 : index
    %c2 = arith.constant 2 : index
    %c0_12 = arith.constant 0 : index
    %18 = vector.load %arg2[%c0_11, %c2, %c0_12] : memref<8x8x32xf32, #tpu.memory_space<vmem>>, vector<8x1x32xf32>
    %19 = vector.shape_cast %18 : vector<8x1x32xf32> to vector<8x32xf32>
    %c0_13 = arith.constant 0 : index
    %c2_14 = arith.constant 2 : index
    %c0_15 = arith.constant 0 : index
    %20 = vector.load %arg3[%c0_13, %c2_14, %c0_15] : memref<8x8x1xf32, #tpu.memory_space<vmem>>, vector<8x1x1xf32>
    %21 = vector.shape_cast %20 : vector<8x1x1xf32> to vector<8x1xf32>
    %22 = vector.broadcast %21 : vector<8x1xf32> to vector<8x32xf32>
    %23 = arith.mulf %19, %22 : vector<8x32xf32>
    %24 = arith.addf %17, %23 : vector<8x32xf32>
    %c0_16 = arith.constant 0 : index
    %c3 = arith.constant 3 : index
    %c0_17 = arith.constant 0 : index
    %25 = vector.load %arg2[%c0_16, %c3, %c0_17] : memref<8x8x32xf32, #tpu.memory_space<vmem>>, vector<8x1x32xf32>
    %26 = vector.shape_cast %25 : vector<8x1x32xf32> to vector<8x32xf32>
    %c0_18 = arith.constant 0 : index
    %c3_19 = arith.constant 3 : index
    %c0_20 = arith.constant 0 : index
    %27 = vector.load %arg3[%c0_18, %c3_19, %c0_20] : memref<8x8x1xf32, #tpu.memory_space<vmem>>, vector<8x1x1xf32>
    %28 = vector.shape_cast %27 : vector<8x1x1xf32> to vector<8x1xf32>
    %29 = vector.broadcast %28 : vector<8x1xf32> to vector<8x32xf32>
    %30 = arith.mulf %26, %29 : vector<8x32xf32>
    %31 = arith.addf %24, %30 : vector<8x32xf32>
    %c0_21 = arith.constant 0 : index
    %c4 = arith.constant 4 : index
    %c0_22 = arith.constant 0 : index
    %32 = vector.load %arg2[%c0_21, %c4, %c0_22] : memref<8x8x32xf32, #tpu.memory_space<vmem>>, vector<8x1x32xf32>
    %33 = vector.shape_cast %32 : vector<8x1x32xf32> to vector<8x32xf32>
    %c0_23 = arith.constant 0 : index
    %c4_24 = arith.constant 4 : index
    %c0_25 = arith.constant 0 : index
    %34 = vector.load %arg3[%c0_23, %c4_24, %c0_25] : memref<8x8x1xf32, #tpu.memory_space<vmem>>, vector<8x1x1xf32>
    %35 = vector.shape_cast %34 : vector<8x1x1xf32> to vector<8x1xf32>
    %36 = vector.broadcast %35 : vector<8x1xf32> to vector<8x32xf32>
    %37 = arith.mulf %33, %36 : vector<8x32xf32>
    %38 = arith.addf %31, %37 : vector<8x32xf32>
    %c0_26 = arith.constant 0 : index
    %c5 = arith.constant 5 : index
    %c0_27 = arith.constant 0 : index
    %39 = vector.load %arg2[%c0_26, %c5, %c0_27] : memref<8x8x32xf32, #tpu.memory_space<vmem>>, vector<8x1x32xf32>
    %40 = vector.shape_cast %39 : vector<8x1x32xf32> to vector<8x32xf32>
    %c0_28 = arith.constant 0 : index
    %c5_29 = arith.constant 5 : index
    %c0_30 = arith.constant 0 : index
    %41 = vector.load %arg3[%c0_28, %c5_29, %c0_30] : memref<8x8x1xf32, #tpu.memory_space<vmem>>, vector<8x1x1xf32>
    %42 = vector.shape_cast %41 : vector<8x1x1xf32> to vector<8x1xf32>
    %43 = vector.broadcast %42 : vector<8x1xf32> to vector<8x32xf32>
    %44 = arith.mulf %40, %43 : vector<8x32xf32>
    %45 = arith.addf %38, %44 : vector<8x32xf32>
    %c0_31 = arith.constant 0 : index
    %c6 = arith.constant 6 : index
    %c0_32 = arith.constant 0 : index
    %46 = vector.load %arg2[%c0_31, %c6, %c0_32] : memref<8x8x32xf32, #tpu.memory_space<vmem>>, vector<8x1x32xf32>
    %47 = vector.shape_cast %46 : vector<8x1x32xf32> to vector<8x32xf32>
    %c0_33 = arith.constant 0 : index
    %c6_34 = arith.constant 6 : index
    %c0_35 = arith.constant 0 : index
    %48 = vector.load %arg3[%c0_33, %c6_34, %c0_35] : memref<8x8x1xf32, #tpu.memory_space<vmem>>, vector<8x1x1xf32>
    %49 = vector.shape_cast %48 : vector<8x1x1xf32> to vector<8x1xf32>
    %50 = vector.broadcast %49 : vector<8x1xf32> to vector<8x32xf32>
    %51 = arith.mulf %47, %50 : vector<8x32xf32>
    %52 = arith.addf %45, %51 : vector<8x32xf32>
    %c0_36 = arith.constant 0 : index
    %c7 = arith.constant 7 : index
    %c0_37 = arith.constant 0 : index
    %53 = vector.load %arg2[%c0_36, %c7, %c0_37] : memref<8x8x32xf32, #tpu.memory_space<vmem>>, vector<8x1x32xf32>
    %54 = vector.shape_cast %53 : vector<8x1x32xf32> to vector<8x32xf32>
    %c0_38 = arith.constant 0 : index
    %c7_39 = arith.constant 7 : index
    %c0_40 = arith.constant 0 : index
    %55 = vector.load %arg3[%c0_38, %c7_39, %c0_40] : memref<8x8x1xf32, #tpu.memory_space<vmem>>, vector<8x1x1xf32>
    %56 = vector.shape_cast %55 : vector<8x1x1xf32> to vector<8x1xf32>
    %57 = vector.broadcast %56 : vector<8x1xf32> to vector<8x32xf32>
    %58 = arith.mulf %54, %57 : vector<8x32xf32>
    %59 = arith.addf %52, %58 : vector<8x32xf32>
    %c0_41 = arith.constant 0 : index
    %c0_42 = arith.constant 0 : index
    %60 = vector.load %arg8[%c0_41, %c0_42] : memref<8x16xf32, #tpu.memory_space<vmem>>, vector<8x16xf32>
    %c0_43 = arith.constant 0 : index
    %c0_44 = arith.constant 0 : index
    %61 = vector.load %arg4[%c0_43, %c0_44] : memref<32x16xf32, #tpu.memory_space<vmem>>, vector<32x16xf32>
    %cst_45 = arith.constant dense<0.000000e+00> : vector<8x16xf32>
    %62 = tpu.matmul %59, %61, %cst_45 {dimension_numbers = #tpu.dot_dimension_numbers<[1], [0], [0], [1], [0, 0, 1, 1], [], []>} : vector<8x32xf32>, vector<32x16xf32>, vector<8x16xf32> -> vector<8x16xf32>
    %63 = arith.addf %60, %62 : vector<8x16xf32>
    %c0_46 = arith.constant 0 : index
    %c0_47 = arith.constant 0 : index
    %64 = vector.load %arg8[%c0_46, %c0_47] : memref<8x16xf32, #tpu.memory_space<vmem>>, vector<8x16xf32>
    tpu.vector_store %arg8[%c0_46, %c0_47], %63 {strides = array<i32>} : memref<8x16xf32, #tpu.memory_space<vmem>>, vector<8x16xf32>,
    %c0_i32_48 = arith.constant 0 : i32
    %65 = arith.cmpi eq, %arg1, %c0_i32_48 : i32
    %66 = arith.extui %65 : i1 to i32
    %c0_i32_49 = arith.constant 0 : i32
    %67 = arith.cmpi ne, %66, %c0_i32_49 : i32
    scf.if %67 {
      %c0_50 = arith.constant 0 : index
      %c0_51 = arith.constant 0 : index
      %68 = vector.load %arg8[%c0_50, %c0_51] : memref<8x16xf32, #tpu.memory_space<vmem>>, vector<8x16xf32>
      %c0_52 = arith.constant 0 : index
      %c0_53 = arith.constant 0 : index
      %69 = vector.load %arg5[%c0_52, %c0_53] : memref<16x32xf32, #tpu.memory_space<vmem>>, vector<16x32xf32>
      %cst_54 = arith.constant dense<0.000000e+00> : vector<8x32xf32>
      %70 = tpu.matmul %68, %69, %cst_54 {dimension_numbers = #tpu.dot_dimension_numbers<[1], [0], [0], [1], [0, 0, 1, 1], [], []>} : vector<8x16xf32>, vector<16x32xf32>, vector<8x32xf32> -> vector<8x32xf32>
      %c0_55 = arith.constant 0 : index
      %c0_56 = arith.constant 0 : index
      %71 = vector.load %arg6[%c0_55, %c0_56] : memref<1x32xf32, #tpu.memory_space<vmem>>, vector<1x32xf32>
      %72 = vector.broadcast %71 : vector<1x32xf32> to vector<8x32xf32>
      %73 = arith.addf %70, %72 : vector<8x32xf32>
      %cst_57 = arith.constant 0.000000e+00 : f32
      %74 = vector.broadcast %cst_57 : f32 to vector<8x32xf32>
      %75 = arith.maximumf %73, %74 : vector<8x32xf32>
      %c0_58 = arith.constant 0 : index
      %c0_59 = arith.constant 0 : index
      %76 = vector.load %arg7[%c0_58, %c0_59] : memref<8x32xf32, #tpu.memory_space<vmem>>, vector<8x32xf32>
      tpu.vector_store %arg7[%c0_58, %c0_59], %75 {strides = array<i32>} : memref<8x32xf32, #tpu.memory_space<vmem>>, vector<8x32xf32>,
    } else {
    }
    return
  }
  func.func @transform_0(%arg0: i32, %arg1: i32) -> (i32, i32, i32) {
    %c0_i32 = arith.constant 0 : i32
    %c0_i32_0 = arith.constant 0 : i32
    return %arg0, %c0_i32, %arg1 : i32, i32, i32
  }
  func.func @transform_1(%arg0: i32, %arg1: i32) -> (i32, i32, i32) {
    %c0_i32 = arith.constant 0 : i32
    %c0_i32_0 = arith.constant 0 : i32
    %c0_i32_1 = arith.constant 0 : i32
    return %arg0, %c0_i32, %c0_i32_0 : i32, i32, i32
  }
  func.func @transform_2(%arg0: i32, %arg1: i32) -> (i32, i32) {
    %c0_i32 = arith.constant 0 : i32
    %c0_i32_0 = arith.constant 0 : i32
    return %arg1, %c0_i32 : i32, i32
  }
  func.func @transform_3(%arg0: i32, %arg1: i32) -> (i32, i32) {
    %c0_i32 = arith.constant 0 : i32
    %c0_i32_0 = arith.constant 0 : i32
    %c0_i32_1 = arith.constant 0 : i32
    return %c0_i32, %c0_i32_0 : i32, i32
  }
  func.func @transform_4(%arg0: i32, %arg1: i32) -> (i32, i32) {
    %c0_i32 = arith.constant 0 : i32
    %c0_i32_0 = arith.constant 0 : i32
    %c0_i32_1 = arith.constant 0 : i32
    return %c0_i32, %c0_i32_0 : i32, i32
  }
  func.func @transform_5(%arg0: i32, %arg1: i32) -> (i32, i32) {
    %c0_i32 = arith.constant 0 : i32
    %c0_i32_0 = arith.constant 0 : i32
    return %arg0, %c0_i32 : i32, i32
  }
}

</mosaic_0001>

<bundles_post_ra>
// kernel: tpu_custom_call.1
= control target key start
LH: loop header
LB: loop body
LE: loop exit
PB: predicated region body
PF: predicated region fallthrough
CT: control target
= control target key end

     0   :  { %v749_v2 = vmov 0   ;;  %s1261_s0 = inlined_call_operand.vmem [shape: f32[8,8,32], index: 0, kind: input, shape index: {}]   ;;  %s1262_s1 = inlined_call_operand.vmem [shape: f32[8,8,1], index: 1, kind: input, shape index: {}]   ;;  %s1263_s2 = inlined_call_operand.vmem [shape: f32[32,16], index: 2, kind: input, shape index: {}]   ;;  %s1264_s3 = inlined_call_operand.vmem [shape: f32[16,32], index: 3, kind: input, shape index: {}]   ;;  %s1265_s4 = inlined_call_operand.vmem [shape: f32[1,32], index: 4, kind: input, shape index: {}]   ;;  %s1266_s5 = inlined_call_operand.hbm [shape: f32[8,32], index: 5, kind: output, shape index: {}]  }
   0x1   :  { %v39_v0 = vld [vmem:[%s1262_s1 + $0x20] sm:$0x1]  ;;  %v37_v1 = vld [vmem:[%s1262_s1 + $0x10] sm:$0x1]  ;;  %721 = vset.pattern.permute.xlu2 %v749_v2  ;;  %720 = vset.pattern.permute.xlu1 %v749_v2 }
   0x2   :  { %v35_v3 = vld [vmem:[%s1262_s1] sm:$0x1]  ;;  %719 = vset.pattern.permute.xlu0 %v749_v2  ;;  %65 = vperm.xlu2 %721, %v39_v0  }
   0x3   :  { %55 = vperm.xlu1 %720, %v37_v1   ;;  %45 = vperm.xlu0 %719, %v35_v3  }
   0x4   :  { %10 = vsyncpa [#allocation4], 0  ;;  %v40_v4 = vld [vmem:[%s1262_s1 + $0x28] sm:$0x1]  ;;  %v38_v5 = vld [vmem:[%s1262_s1 + $0x18] sm:$0x1] }
   0x5   :  { %v36_v6 = vld [vmem:[%s1262_s1 + $0x8] sm:$0x1]  ;;  %v107_v7 = vld [vmem:[%s1262_s1 + $0x1] sm:$0x1]  ;;  %v42_v8 = vld [vmem:[%s1262_s1 + $0x38] sm:$0x1] }
   0x6   :  { %v41_v9 = vld [vmem:[%s1262_s1 + $0x30] sm:$0x1]  ;;  %v110_v10 = vld [vmem:[%s1262_s1 + $0x19] sm:$0x1]  ;;  %v109_v11 = vld [vmem:[%s1262_s1 + $0x11] sm:$0x1] }
   0x7   :  { %v108_v12 = vld [vmem:[%s1262_s1 + $0x9] sm:$0x1]  ;;  %v181_v13 = vld [vmem:[%s1262_s1 + $0x12] sm:$0x1]  ;;  %v111_v14 = vld [vmem:[%s1262_s1 + $0x21] sm:$0x1] }
   0x8   :  { %v180_v15 = vld [vmem:[%s1262_s1 + $0xa] sm:$0x1]  ;;  %v182_v16 = vld [vmem:[%s1262_s1 + $0x1a] sm:$0x1]  ;;  %v179_v17 = vld [vmem:[%s1262_s1 + $0x2] sm:$0x1] }
   0x9   :  { %v112_v18 = vld [vmem:[%s1262_s1 + $0x29] sm:$0x1]  ;;  %v183_v19 = vld [vmem:[%s1262_s1 + $0x22] sm:$0x1]  ;;  %v113_v20 = vld [vmem:[%s1262_s1 + $0x31] sm:$0x1] }
   0xa   :  { %70 = vperm.xlu2 %721, %v40_v4   ;;  %v252_v21 = vld [vmem:[%s1262_s1 + $0xb] sm:$0x1]  ;;  %v184_v22 = vld [vmem:[%s1262_s1 + $0x2a] sm:$0x1]  ;;  %v114_v23 = vld [vmem:[%s1262_s1 + $0x39] sm:$0x1] }
   0xb   :  { %60 = vperm.xlu1 %720, %v38_v5   ;;  %50 = vperm.xlu0 %719, %v36_v6   ;;  %v253_v24 = vld [vmem:[%s1262_s1 + $0x13] sm:$0x1]  ;;  %v324_v25 = vld [vmem:[%s1262_s1 + $0xc] sm:$0x1]  ;;  %v254_v26 = vld [vmem:[%s1262_s1 + $0x1b] sm:$0x1] }
   0xc   :  { %v251_v27 = vld [vmem:[%s1262_s1 + $0x3] sm:$0x1]  ;;  %v325_v28 = vld [vmem:[%s1262_s1 + $0x14] sm:$0x1]  ;;  %v185_v30 = vld [vmem:[%s1262_s1 + $0x32] sm:$0x1] }
   0xd   :  { %v255_v29 = vld [vmem:[%s1262_s1 + $0x23] sm:$0x1]  ;;  %v323_v31 = vld [vmem:[%s1262_s1 + $0x4] sm:$0x1]  ;;  %v256_v32 = vld [vmem:[%s1262_s1 + $0x2b] sm:$0x1] }
   0xe   :  { %v186_v33 = vld [vmem:[%s1262_s1 + $0x3a] sm:$0x1]  ;;  %v257_v34 = vld [vmem:[%s1262_s1 + $0x33] sm:$0x1]  ;;  %v396_v35 = vld [vmem:[%s1262_s1 + $0xd] sm:$0x1] }
   0xf   :  { %v326_v36 = vld [vmem:[%s1262_s1 + $0x1c] sm:$0x1]  ;;  %v258_v38 = vld [vmem:[%s1262_s1 + $0x3b] sm:$0x1]  ;;  %v397_v39 = vld [vmem:[%s1262_s1 + $0x15] sm:$0x1] }
  0x10   :  { %v327_v40 = vld [vmem:[%s1262_s1 + $0x24] sm:$0x1]  ;;  %v398_v42 = vld [vmem:[%s1262_s1 + $0x1d] sm:$0x1]  ;;  %v395_v43 = vld [vmem:[%s1262_s1 + $0x5] sm:$0x1] }
  0x11   :  { %v328_v44 = vld [vmem:[%s1262_s1 + $0x2c] sm:$0x1]  ;;  %v399_v46 = vld [vmem:[%s1262_s1 + $0x25] sm:$0x1]  ;;  %v329_v47 = vld [vmem:[%s1262_s1 + $0x34] sm:$0x1] }
  0x12   :  { %117 = vperm.xlu2 %721, %v107_v7   ;;  %v468_v48 = vld [vmem:[%s1262_s1 + $0xe] sm:$0x1]  ;;  %v99_v49 = vld [vmem:[%s1261_s0 + $0x1] sm:$0x1]  ;;  %v27_v50 = vld [vmem:[%s1261_s0] sm:$0x1] }
  0x13   :  { %80 = vperm.xlu1 %720, %v42_v8   ;;  %75 = vperm.xlu0 %719, %v41_v9   ;;  %v400_v56 = vld [vmem:[%s1262_s1 + $0x2d] sm:$0x1]  ;;  %v330_v58 = vld [vmem:[%s1262_s1 + $0x3c] sm:$0x1]  ;;  %v469_v59 = vld [vmem:[%s1262_s1 + $0x16] sm:$0x1] }
  0x14   :  { %v102_v60 = vld [vmem:[%s1261_s0 + $0x19] sm:$0x1]  ;;  %v30_v61 = vld [vmem:[%s1261_s0 + $0x18] sm:$0x1]  ;;  %v540_v3 = vld [vmem:[%s1262_s1 + $0xf] sm:$0x1] }
  0x15   :  { %v470_v5 = vld [vmem:[%s1262_s1 + $0x1e] sm:$0x1]  ;;  %v467_v6 = vld [vmem:[%s1262_s1 + $0x6] sm:$0x1]  ;;  %v174_v7 = vld [vmem:[%s1261_s0 + $0x1a] sm:$0x1] }
  0x16   :  { %vm617_vm0 = vcmask 1041409   ;;  %vm620_vm1 = vcmask 1042434   ;;  %vm25_vm2 = vcmask 130048   ;;  %vm623_vm3 = vcmask 1043459   ;;  %s751_s6 = smov [#allocation3]  }
  0x17   :  { %vm626_vm4 = vcmask 1044484   ;;  %vm629_vm5 = vcmask 1045509   ;;  %vm632_vm6 = vcmask 1046534   ;;  %vm635_vm7 = vcmask 1047559   ;;  %s703_s7 = sshll.u32 %s751_s6, 4  ;;  %s704_s7 = int_to_ptr.vmem [resolvable:$true] %s703_s7 }
  0x18   :  { %vm637_vm8 = vcmask 261120  }
  0x1a   :  { %132 = vperm.xlu2 %721, %v110_v10  }
  0x1b   :  { %127 = vperm.xlu1 %720, %v109_v11   ;;  %122 = vperm.xlu0 %719, %v108_v12  }
  0x22   :  { %199 = vperm.xlu2 %721, %v181_v13   ;;  %v541_v13 = vld [vmem:[%s1262_s1 + $0x17] sm:$0x1] }
  0x23   :  { %137 = vperm.xlu1 %720, %v111_v14   ;;  %194 = vperm.xlu0 %719, %v180_v15   ;;  %v471_v14 = vld [vmem:[%s1262_s1 + $0x26] sm:$0x1]  ;;  %v401_v15 = vld [vmem:[%s1262_s1 + $0x35] sm:$0x1] }
  0x2a   :  { %204 = vperm.xlu2 %721, %v182_v16   ;;  %v29_v16 = vld [vmem:[%s1261_s0 + $0x10] sm:$0x1] }
  0x2b   :  { %189 = vperm.xlu1 %720, %v179_v17   ;;  %142 = vperm.xlu0 %719, %v112_v18   ;;  %v28_v17 = vld [vmem:[%s1261_s0 + $0x8] sm:$0x1]  ;;  %v101_v18 = vld [vmem:[%s1261_s0 + $0x11] sm:$0x1] }
  0x32   :  { %209 = vperm.xlu2 %721, %v183_v19   ;;  %v100_v19 = vld [vmem:[%s1261_s0 + $0x9] sm:$0x1] }
  0x33   :  { %147 = vperm.xlu1 %720, %v113_v20   ;;  %266 = vperm.xlu0 %719, %v252_v21   ;;  %v173_v21 = vld [vmem:[%s1261_s0 + $0x12] sm:$0x1] }
  0x3a   :  { %214 = vperm.xlu2 %721, %v184_v22  }
  0x3b   :  { %152 = vperm.xlu1 %720, %v114_v23   ;;  %271 = vperm.xlu0 %719, %v253_v24  }
  0x42   :  { %338 = vperm.xlu2 %721, %v324_v25  }
  0x43   :  { %276 = vperm.xlu1 %720, %v254_v26   ;;  %261 = vperm.xlu0 %719, %v251_v27  }
  0x4a   :  { %343 = vperm.xlu2 %721, %v325_v28   ;;  %v539_v28 = vld [vmem:[%s1262_s1 + $0x7] sm:$0x1] }
  0x4b   :  { %281 = vperm.xlu1 %720, %v255_v29   ;;  %219 = vperm.xlu0 %719, %v185_v30  }
  0x52   :  { %333 = vperm.xlu2 %721, %v323_v31  }
  0x53   :  { %286 = vperm.xlu1 %720, %v256_v32   ;;  %224 = vperm.xlu0 %719, %v186_v33   ;;  %v472_v32 = vld [vmem:[%s1262_s1 + $0x2e] sm:$0x1]  ;;  %v402_v33 = vld [vmem:[%s1262_s1 + $0x3d] sm:$0x1] }
  0x5a   :  { %291 = vperm.xlu2 %721, %v257_v34  }
  0x5b   :  { %410 = vperm.xlu1 %720, %v396_v35   ;;  %348 = vperm.xlu0 %719, %v326_v36   ;;  %v31_v35 = vld [vmem:[%s1261_s0 + $0x20] sm:$0x1]  ;;  %v103_v36 = vld [vmem:[%s1261_s0 + $0x21] sm:$0x1] }
  0x5c   :  { %v890_v37 = vpop.permute.xlu2 %65 }
  0x62   :  { %296 = vperm.xlu2 %721, %v258_v38   ;;  %v172_v38 = vld [vmem:[%s1261_s0 + $0xa] sm:$0x1] }
  0x63   :  { %415 = vperm.xlu1 %720, %v397_v39   ;;  %353 = vperm.xlu0 %719, %v327_v40   ;;  %v175_v40 = vld [vmem:[%s1261_s0 + $0x22] sm:$0x1] }
  0x64   :  { %v901_v41 = vpop.permute.xlu2 %70 }
  0x6a   :  { %420 = vperm.xlu2 %721, %v398_v42  }
  0x6b   :  { %405 = vperm.xlu1 %720, %v395_v43   ;;  %358 = vperm.xlu0 %719, %v328_v44   ;;  %v87_v44 = vmul.f32 %v890_v37, %v31_v35  ;;  %v32_v37 = vld [vmem:[%s1261_s0 + $0x28] sm:$0x1] }
  0x6c   :  { %v118_v45 = vpop.permute.xlu2 %117 }
  0x6d   :  { %v155_v51 = vmul.f32 %v118_v45, %v99_v49 }
  0x72   :  { %425 = vperm.xlu2 %721, %v399_v46  }
  0x73   :  { %363 = vperm.xlu1 %720, %v329_v47   ;;  %482 = vperm.xlu0 %719, %v468_v48   ;;  %v543_v47 = vld [vmem:[%s1262_s1 + $0x27] sm:$0x1] }
  0x74   :  { %v133_v52 = vpop.permute.xlu2 %132 }
  0x75   :  { %v56_v53 = vpop.permute.xlu1 %55  ;;  %v46_v54 = vpop.permute.xlu0 %45  ;;  %v158_v62 = vmul.f32 %v133_v52, %v102_v60  ;;  %v542_v52 = vld [vmem:[%s1262_s1 + $0x1f] sm:$0x1] }
  0x76   :  { %v83_v55 = vmul.f32 %v46_v54, %v27_v50  ;;  %v85_v24 = vmul.f32 %v56_v53, %v29_v16  ;;  %v171_v54 = vld [vmem:[%s1261_s0 + $0x2] sm:$0x1] }
  0x78   :  { %v930_v57 = vadd.f32 %v155_v51, %v83_v55  ;;  %v473_v51 = vld [vmem:[%s1262_s1 + $0x36] sm:$0x1]  ;;  %v104_v55 = vld [vmem:[%s1261_s0 + $0x29] sm:$0x1] }
  0x7a   :  { %430 = vperm.xlu2 %721, %v400_v56  }
  0x7b   :  { %368 = vperm.xlu1 %720, %v330_v58   ;;  %487 = vperm.xlu0 %719, %v469_v59   ;;  %v176_v58 = vld [vmem:[%s1261_s0 + $0x2a] sm:$0x1] }
  0x7c   :  { %v200_v63 = vpop.permute.xlu2 %199 }
  0x7d   :  { %v61_v0 = vpop.permute.xlu1 %60  ;;  %v51_v1 = vpop.permute.xlu0 %50  ;;  %v229_v29 = vmul.f32 %v200_v63, %v173_v21  ;;  %v546_v21 = vld [vmem:[%s1262_s1 + $0x3f] sm:$0x1] }
  0x7e   :  { %v86_v2 = vmul.f32 %v61_v0, %v30_v61  ;;  %v84_v25 = vmul.f32 %v51_v1, %v28_v17  ;;  %v88_v61 = vmul.f32 %v901_v41, %v32_v37  ;;  %v545_v0 = vld [vmem:[%s1262_s1 + $0x37] sm:$0x1] }
  0x80   :  { %v166_v4 = vadd.f32 %v158_v62, %v86_v2 }
  0x82   :  { %554 = vperm.xlu2 %721, %v540_v3  }
  0x83   :  { %492 = vperm.xlu1 %720, %v470_v5   ;;  %477 = vperm.xlu0 %719, %v467_v6   ;;  %v474_v5 = vld [vmem:[%s1262_s1 + $0x3e] sm:$0x1]  ;;  %v33_v6 = vld [vmem:[%s1261_s0 + $0x30] sm:$0x1] }
  0x84   :  { %v205_v8 = vpop.permute.xlu2 %204 }
  0x85   :  { %v230_v9 = vmul.f32 %v205_v8, %v174_v7  ;;  %v956_v10 = vpop.permute.xlu1 %80  ;;  %v958_v11 = vpop.permute.xlu0 %75  ;;  %v244_v7 = vld [vmem:[%s1261_s0 + $0xb] sm:$0x1] }
  0x87   :  { %v960_v12 = vadd.f32 %v230_v9, %v166_v4  ;;  %v544_v4 = vld [vmem:[%s1262_s1 + $0x2f] sm:$0x1]  ;;  %v316_v9 = vld [vmem:[%s1261_s0 + $0xc] sm:$0x1] }
  0x8a   :  { %559 = vperm.xlu2 %721, %v541_v13  }
  0x8b   :  { %497 = vperm.xlu1 %720, %v471_v14   ;;  %435 = vperm.xlu0 %719, %v401_v15   ;;  %v89_v15 = vmul.f32 %v958_v11, %v33_v6  ;;  %v245_v11 = vld [vmem:[%s1261_s0 + $0x13] sm:$0x1]  ;;  %v318_v6 = vld [vmem:[%s1261_s0 + $0x1c] sm:$0x1] }
  0x8c   :  { %v210_v20 = vpop.permute.xlu2 %209 }
  0x8d   :  { %v128_v22 = vpop.permute.xlu1 %127  ;;  %v123_v23 = vpop.permute.xlu0 %122  ;;  %v231_v48 = vmul.f32 %v210_v20, %v175_v40 }
  0x8e   :  { %v157_v26 = vmul.f32 %v128_v22, %v101_v18  ;;  %v156_v27 = vmul.f32 %v123_v23, %v100_v19  ;;  %v34_v23 = vld [vmem:[%s1261_s0 + $0x38] sm:$0x1] }
  0x90   :  { %v165_v30 = vadd.f32 %v157_v26, %v85_v24  ;;  %v164_v31 = vadd.f32 %v156_v27, %v84_v25  ;;  %v106_v24 = vld [vmem:[%s1261_s0 + $0x39] sm:$0x1]  ;;  %v317_v26 = vld [vmem:[%s1261_s0 + $0x14] sm:$0x1] }
  0x92   :  { %549 = vperm.xlu2 %721, %v539_v28   ;;  %v995_v34 = vadd.f32 %v229_v29, %v165_v30  ;;  %v90_v29 = vmul.f32 %v956_v10, %v34_v23  ;;  %v315_v10 = vld [vmem:[%s1261_s0 + $0x4] sm:$0x1] }
  0x93   :  { %502 = vperm.xlu1 %720, %v472_v32   ;;  %440 = vperm.xlu0 %719, %v402_v33  }
  0x94   :  { %v215_v39 = vpop.permute.xlu2 %214 }
  0x95   :  { %v138_v42 = vpop.permute.xlu1 %137  ;;  %v195_v43 = vpop.permute.xlu0 %194  ;;  %v232_v1 = vmul.f32 %v215_v39, %v176_v58  ;;  %v243_v39 = vld [vmem:[%s1261_s0 + $0x3] sm:$0x1] }
  0x96   :  { %v159_v45 = vmul.f32 %v138_v42, %v103_v36  ;;  %v228_v46 = vmul.f32 %v195_v43, %v172_v38  ;;  %v246_v38 = vld [vmem:[%s1261_s0 + $0x1b] sm:$0x1] }
  0x98   :  { %v167_v49 = vadd.f32 %v159_v45, %v87_v44  ;;  %v236_v50 = vadd.f32 %v228_v46, %v164_v31 }
  0x9a   :  { %569 = vperm.xlu2 %721, %v543_v47   ;;  %v1019_v53 = vadd.f32 %v231_v48, %v167_v49  ;;  %v247_v49 = vld [vmem:[%s1261_s0 + $0x23] sm:$0x1] }
  0x9b   :  { %507 = vperm.xlu1 %720, %v473_v51   ;;  %564 = vperm.xlu0 %719, %v542_v52   ;;  %v249_v52 = vld [vmem:[%s1261_s0 + $0x33] sm:$0x1] }
  0x9c   :  { %v339_v56 = vpop.permute.xlu2 %338 }
  0x9d   :  { %v190_v59 = vpop.permute.xlu1 %189  ;;  %v143_v60 = vpop.permute.xlu0 %142  ;;  %v372_v18 = vmul.f32 %v339_v56, %v316_v9 }
  0x9e   :  { %v227_v62 = vmul.f32 %v190_v59, %v171_v54  ;;  %v160_v63 = vmul.f32 %v143_v60, %v104_v55 }
  0xa0   :  { %v235_v2 = vadd.f32 %v227_v62, %v930_v57  ;;  %v168_v3 = vadd.f32 %v160_v63, %v88_v61  ;;  %v105_v57 = vld [vmem:[%s1261_s0 + $0x31] sm:$0x1]  ;;  %v248_v61 = vld [vmem:[%s1261_s0 + $0x2b] sm:$0x1]  ;;  %v178_v62 = vld [vmem:[%s1261_s0 + $0x3a] sm:$0x1] }
  0xa2   :  { %579 = vperm.xlu2 %721, %v545_v0   ;;  %v1044_v41 = vadd.f32 %v232_v1, %v168_v3 }
  0xa3   :  { %574 = vperm.xlu1 %720, %v544_v4   ;;  %512 = vperm.xlu0 %719, %v474_v5   ;;  %v388_v5 = vld [vmem:[%s1261_s0 + $0xd] sm:$0x1] }
  0xa4   :  { %v344_v8 = vpop.permute.xlu2 %343 }
  0xa5   :  { %v148_v13 = vpop.permute.xlu1 %147  ;;  %v267_v14 = vpop.permute.xlu0 %266  ;;  %v373_v32 = vmul.f32 %v344_v8, %v317_v26 }
  0xa6   :  { %v161_v16 = vmul.f32 %v148_v13, %v105_v57  ;;  %v300_v17 = vmul.f32 %v267_v14, %v244_v7 }
  0xa8   :  { %v169_v19 = vadd.f32 %v161_v16, %v89_v15  ;;  %v308_v20 = vadd.f32 %v300_v17, %v236_v50  ;;  %v177_v50 = vld [vmem:[%s1261_s0 + $0x32] sm:$0x1] }
  0xaa   :  { %v380_v22 = vadd.f32 %v372_v18, %v308_v20 }
  0xab   :  { %584 = vperm.xlu0 %719, %v546_v21  }
  0xac   :  { %v334_v25 = vpop.permute.xlu2 %333 }
  0xad   :  { %v153_v27 = vpop.permute.xlu1 %152  ;;  %v272_v28 = vpop.permute.xlu0 %271  ;;  %v371_v46 = vmul.f32 %v334_v25, %v315_v10  ;;  %v461_v25 = vld [vmem:[%s1261_s0 + $0x16] sm:$0x1]  ;;  %v459_v10 = vld [vmem:[%s1261_s0 + $0x6] sm:$0x1] }
  0xae   :  { %v162_v30 = vmul.f32 %v153_v27, %v106_v24  ;;  %v301_v31 = vmul.f32 %v272_v28, %v245_v11  ;;  %v389_v24 = vld [vmem:[%s1261_s0 + $0x15] sm:$0x1] }
  0xb0   :  { %v170_v33 = vadd.f32 %v162_v30, %v90_v29  ;;  %v309_v35 = vadd.f32 %v301_v31, %v995_v34  ;;  %v387_v30 = vld [vmem:[%s1261_s0 + $0x5] sm:$0x1] }
  0xb2   :  { %v381_v36 = vadd.f32 %v373_v32, %v309_v35 }
  0xb4   :  { %v292_v40 = vpop.permute.xlu2 %291 }
  0xb5   :  { %v277_v42 = vpop.permute.xlu1 %276  ;;  %v262_v43 = vpop.permute.xlu0 %261  ;;  %v305_v56 = vmul.f32 %v292_v40, %v249_v52 }
  0xb6   :  { %v302_v44 = vmul.f32 %v277_v42, %v246_v38  ;;  %v299_v45 = vmul.f32 %v262_v43, %v243_v39  ;;  %v533_v38 = vld [vmem:[%s1261_s0 + $0x17] sm:$0x1] }
  0xb8   :  { %v310_v34 = vadd.f32 %v302_v44, %v960_v12  ;;  %v307_v47 = vadd.f32 %v299_v45, %v235_v2 }
  0xba   :  { %v379_v48 = vadd.f32 %v371_v46, %v307_v47 }
  0xbc   :  { %v1092_v51 = vpop.permute.xlu2 %296 }
  0xbd   :  { %v282_v37 = vpop.permute.xlu1 %281  ;;  %v220_v54 = vpop.permute.xlu0 %219 }
  0xbe   :  { %v303_v55 = vmul.f32 %v282_v37, %v247_v49  ;;  %v233_v12 = vmul.f32 %v220_v54, %v177_v50 }
  0xc0   :  { %v1098_v58 = vadd.f32 %v303_v55, %v1019_v53  ;;  %v241_v59 = vadd.f32 %v233_v12, %v169_v19 }
  0xc2   :  { %v1100_v60 = vadd.f32 %v305_v56, %v241_v59 }
  0xc4   :  { %v1108_v63 = vpop.permute.xlu2 %420 }
  0xc5   :  { %v287_v0 = vpop.permute.xlu1 %286  ;;  %v225_v1 = vpop.permute.xlu0 %224 }
  0xc6   :  { %v304_v2 = vmul.f32 %v287_v0, %v248_v61  ;;  %v234_v3 = vmul.f32 %v225_v1, %v178_v62  ;;  %v607_v0 = vld [vmem:[%s1263_s2 + $0x18] sm:$0xff]  ;;  %v606_v1 = vld [vmem:[%s1263_s2 + $0x10] sm:$0xff] }
  0xc7   :  { %652 = vmatpush.msra.mxu0 %v607_v0 }
  0xc8   :  { %v1111_v53 = vadd.f32 %v304_v2, %v1044_v41  ;;  %v1113_v4 = vadd.f32 %v234_v3, %v170_v33  ;;  %v532_v33 = vld [vmem:[%s1261_s0 + $0xf] sm:$0x1] }
  0xc9   :  { %653 = vmatpush.msra.mxu0 %v606_v1  ;;  %v605_v3 = vld [vmem:[%s1263_s2 + $0x8] sm:$0xff] }
  0xcb   :  { %654 = vmatpush.msra.mxu0 %v605_v3 }
  0xcc   :  { %v1121_v57 = vpop.permute.xlu2 %425 }
  0xcd   :  { %v411_v7 = vpop.permute.xlu1 %410  ;;  %v349_v8 = vpop.permute.xlu0 %348 }
  0xce   :  { %v444_v9 = vmul.f32 %v411_v7, %v388_v5  ;;  %v374_v13 = vmul.f32 %v349_v8, %v318_v6  ;;  %v604_v5 = vld [vmem:[%s1263_s2] sm:$0xff] }
  0xcf   :  { %v391_v6 = vld [vmem:[%s1261_s0 + $0x25] sm:$0x1]  ;;  %v463_v7 = vld [vmem:[%s1261_s0 + $0x26] sm:$0x1]  ;;  %655 = vmatpush.msra.mxu0 %v604_v5 }
  0xd0   :  { %v452_v14 = vadd.f32 %v444_v9, %v380_v22  ;;  %v1123_v15 = vadd.f32 %v374_v13, %v310_v34  ;;  %v460_v22 = vld [vmem:[%s1261_s0 + $0xe] sm:$0x1] }
  0xd4   :  { %v1125_v17 = vpop.permute.xlu2 %430 }
  0xd5   :  { %v416_v41 = vpop.permute.xlu1 %415  ;;  %v354_v16 = vpop.permute.xlu0 %353 }
  0xd6   :  { %v445_v26 = vmul.f32 %v416_v41, %v389_v24  ;;  %v390_v41 = vld [vmem:[%s1261_s0 + $0x1d] sm:$0x1]  ;;  %v320_v24 = vld [vmem:[%s1261_s0 + $0x2c] sm:$0x1] }
  0xd8   :  { %v453_v32 = vadd.f32 %v445_v26, %v381_v36  ;;  %v531_v36 = vld [vmem:[%s1261_s0 + $0x7] sm:$0x1]  ;;  %v393_v26 = vld [vmem:[%s1261_s0 + $0x35] sm:$0x1] }
  0xdc   :  { %v555_v20 = vpop.permute.xlu2 %554 }
  0xdd   :  { %v406_v18 = vpop.permute.xlu1 %405  ;;  %v1127_v19 = vpop.permute.xlu0 %358  ;;  %v588_v42 = vmul.f32 %v555_v20, %v532_v33 }
  0xde   :  { %v443_v35 = vmul.f32 %v406_v18, %v387_v30  ;;  %v462_v18 = vld [vmem:[%s1261_s0 + $0x1e] sm:$0x1]  ;;  %v534_v30 = vld [vmem:[%s1261_s0 + $0x1f] sm:$0x1] }
  0xe0   :  { %v451_v34 = vadd.f32 %v443_v35, %v379_v48  ;;  %v319_v48 = vld [vmem:[%s1261_s0 + $0x24] sm:$0x1] }
  0xe1   :  { %v375_v2 = vmul.f32 %v354_v16, %v319_v48  ;;  %v447_v16 = vmul.f32 %v1121_v57, %v391_v6  ;;  %v535_v57 = vld [vmem:[%s1261_s0 + $0x27] sm:$0x1]  ;;  %v466_v6 = vld [vmem:[%s1261_s0 + $0x3e] sm:$0x1] }
  0xe3   :  { %v383_v8 = vadd.f32 %v375_v2, %v1098_v58  ;;  %v321_v58 = vld [vmem:[%s1261_s0 + $0x34] sm:$0x1] }
  0xe4   :  { %v560_v11 = vpop.permute.xlu2 %559 }
  0xe5   :  { %v1129_v21 = vpop.permute.xlu1 %363  ;;  %v483_v23 = vpop.permute.xlu0 %482  ;;  %v589_v44 = vmul.f32 %v560_v11, %v533_v38  ;;  %v455_v11 = vadd.f32 %v447_v16, %v383_v8 }
  0xe6   :  { %v516_v29 = vmul.f32 %v483_v23, %v460_v22  ;;  %v446_v22 = vmul.f32 %v1108_v63, %v390_v41 }
  0xe8   :  { %v524_v39 = vadd.f32 %v516_v29, %v452_v14  ;;  %v750_v14 = vmov 0.0   ;;  %v454_v63 = vadd.f32 %v446_v22, %v1123_v15  ;;  %v464_v15 = vld [vmem:[%s1261_s0 + $0x2e] sm:$0x1] }
  0xe9   :  { %26 = vst.msk [vmem:[#allocation2] sm:$0xff] %vm25_vm2, %v750_v14  ;;  %v668_v22 = vld [vmem:[%s1264_s3 + $0x8] sm:$0xff] }
  0xea   :  { %v596_v47 = vadd.f32 %v588_v42, %v524_v39  ;;  %690 = vmatpush.msra.mxu1 %v668_v22 }
  0xec   :  { %v550_v43 = vpop.permute.xlu2 %549  ;;  %v616_v54 = vrot.slane %v596_v47, 7 }
  0xed   :  { %v1140_v27 = vpop.permute.xlu1 %368  ;;  %v488_v28 = vpop.permute.xlu0 %487  ;;  %v587_v52 = vmul.f32 %v550_v43, %v531_v36 }
  0xee   :  { %v517_v31 = vmul.f32 %v488_v28, %v461_v25  ;;  %v377_v28 = vmul.f32 %v1129_v21, %v321_v58  ;;  %v392_v21 = vld [vmem:[%s1261_s0 + $0x2d] sm:$0x1] }
  0xf0   :  { %v525_v40 = vadd.f32 %v517_v31, %v453_v32  ;;  %v376_v31 = vmul.f32 %v1127_v19, %v320_v24  ;;  %v465_v32 = vld [vmem:[%s1261_s0 + $0x36] sm:$0x1]  ;;  %v385_v42 = vadd.f32 %v377_v28, %v1100_v60  ;;  %v537_v60 = vld [vmem:[%s1261_s0 + $0x37] sm:$0x1] }
  0xf2   :  { %v597_v50 = vadd.f32 %v589_v44, %v525_v40  ;;  %v384_v44 = vadd.f32 %v376_v31, %v1111_v53  ;;  %v322_v53 = vld [vmem:[%s1261_s0 + $0x3c] sm:$0x1] }
  0xf3   :  { %v378_v1 = vmul.f32 %v1140_v27, %v322_v53 }
  0xf4   :  { %v619_v12 = vrot.slane %v597_v50, 6  ;;  %v570_v23 = vpop.permute.xlu2 %569 }
  0xf5   :  { %v493_v45 = vpop.permute.xlu1 %492  ;;  %v478_v46 = vpop.permute.xlu0 %477  ;;  %v591_v33 = vmul.f32 %v570_v23, %v535_v57  ;;  %v667_v57 = vld [vmem:[%s1264_s3] sm:$0xff]  ;;  %s705_s3 = sshll.u32 %s1266_s5, 4  ;;  %s706_s3 = int_to_ptr.hbm [resolvable:$true] %s705_s3 }
  0xf6   :  { %v515_v49 = vmul.f32 %v478_v46, %v459_v10  ;;  %v518_v25 = vmul.f32 %v493_v45, %v462_v18  ;;  %v250_v46 = vld [vmem:[%s1261_s0 + $0x3b] sm:$0x1]  ;;  %691 = vmatpush.msra.mxu1 %v667_v57 }
  0xf7   :  { %v306_v48 = vmul.f32 %v1092_v51, %v250_v46  ;;  %v538_v51 = vld [vmem:[%s1261_s0 + $0x3f] sm:$0x1] }
  0xf8   :  { %v523_v37 = vadd.f32 %v515_v49, %v451_v34  ;;  %v526_v40 = vadd.f32 %v518_v25, %v454_v63  ;;  %v448_v34 = vmul.f32 %v1125_v17, %v392_v21  ;;  %v603_v25 = vld [vmem:[#allocation2] sm:$0xff] }
  0xfa   :  { %v595_v55 = vadd.f32 %v587_v52, %v523_v37 }
  0xfc   :  { %v618_v56 = vsel %vm617_vm0, %v616_v54, %v595_v55  ;;  %v580_v47 = vpop.permute.xlu2 %579  ;;  %v536_v54 = vld [vmem:[%s1261_s0 + $0x2f] sm:$0x1]  ;;  %v456_v55 = vadd.f32 %v448_v34, %v384_v44 }
  0xfd   :  { %v498_v59 = vpop.permute.xlu1 %497  ;;  %v436_v61 = vpop.permute.xlu0 %435  ;;  %v1157_v62 = vsel %vm620_vm1, %v619_v12, %v618_v56  ;;  %v593_v12 = vmul.f32 %v580_v47, %v537_v60  ;;  %v394_v56 = vld [vmem:[%s1261_s0 + $0x3d] sm:$0x1] }
  0xfe   :  { %v519_v20 = vmul.f32 %v498_v59, %v463_v7  ;;  %v449_v35 = vmul.f32 %v436_v61, %v393_v26 }
 0x100   :  { %v527_v29 = vadd.f32 %v519_v20, %v455_v11  ;;  %v457_v45 = vadd.f32 %v449_v35, %v385_v42 }
 0x102   :  { %v599_v43 = vadd.f32 %v591_v33, %v527_v29 }
 0x104   :  { %v625_v52 = vrot.slane %v599_v43, 4 }
 0x105   :  { %v503_v9 = vpop.permute.xlu1 %502  ;;  %v441_v13 = vpop.permute.xlu0 %440 }
 0x106   :  { %v520_v49 = vmul.f32 %v503_v9, %v464_v15  ;;  %v450_v7 = vmul.f32 %v441_v13, %v394_v56 }
 0x108   :  { %v528_v2 = vadd.f32 %v520_v49, %v456_v55 }
 0x10d   :  { %v508_v38 = vpop.permute.xlu1 %507  ;;  %v565_v39 = vpop.permute.xlu0 %564 }
 0x10e   :  { %v590_v10 = vmul.f32 %v565_v39, %v534_v30  ;;  %v521_v19 = vmul.f32 %v508_v38, %v465_v32  ;;  %v722_v30 = vld [vmem:[%s1265_s4] ss:$0 sm:$0xff] }
 0x110   :  { %v598_v36 = vadd.f32 %v590_v10, %v526_v40  ;;  %v529_v37 = vadd.f32 %v521_v19, %v457_v45 }
 0x112   :  { %v622_v50 = vrot.slane %v598_v36, 5  ;;  %v601_v5 = vadd.f32 %v593_v12, %v529_v37 }
 0x114   :  { %v624_v17 = vsel %vm623_vm3, %v622_v50, %v1157_v62  ;;  %v314_v62 = vadd.f32 %v306_v48, %v1113_v4  ;;  %v631_v16 = vrot.slane %v601_v5, 2 }
 0x115   :  { %v575_v59 = vpop.permute.xlu1 %574  ;;  %v513_v61 = vpop.permute.xlu0 %512  ;;  %v627_v0 = vsel %vm626_vm4, %v625_v52, %v624_v17 }
 0x116   :  { %v592_v3 = vmul.f32 %v575_v59, %v536_v54  ;;  %v386_v9 = vadd.f32 %v378_v1, %v314_v62  ;;  %v522_v41 = vmul.f32 %v513_v61, %v466_v6 }
 0x118   :  { %v600_v8 = vadd.f32 %v592_v3, %v528_v2  ;;  %v458_v27 = vadd.f32 %v450_v7, %v386_v9 }
 0x11a   :  { %v628_v14 = vrot.slane %v600_v8, 3  ;;  %v530_v23 = vadd.f32 %v522_v41, %v458_v27 }
 0x11c   :  { %v630_v18 = vsel %vm629_vm5, %v628_v14, %v627_v0 }
 0x11d   :  { %v585_v20 = vpop.permute.xlu0 %584  ;;  %v633_v58 = vsel %vm632_vm6, %v631_v16, %v630_v18 }
 0x11e   :  { %v594_v24 = vmul.f32 %v585_v20, %v538_v51 }
 0x120   :  { %v602_v11 = vadd.f32 %v594_v24, %v530_v23 }
 0x122   :  { %v634_v4 = vrot.slane %v602_v11, 1 }
 0x124   :  { %v636_v13 = vsel %vm635_vm7, %v634_v4, %v633_v58 }
 0x125   :  { %714 = vmatmul.msk.f32.vlgmr.msra.gmra.mxu0 %vm637_vm8, %v636_v13 }
 0x1a2   :  { %v657_v26 = vpop.f32.mrf.mxu0 }
 0x1a3   :  { %v660_v28 = vadd.f32 %v657_v26, %v603_v25 }
 0x1a5   :  { %662 = vst.msk [vmem:[#allocation2] sm:$0xff] %vm25_vm2, %v660_v28 }
 0x1ac   :  { %v666_v29 = vld [vmem:[#allocation2] sm:$0xff] }
 0x1ad   :  { %715 = vmatmul.msk.f32.vlgmr.msra.gmra.mxu1 %vm25_vm2, %v666_v29 }
 0x22a   :  { %v693_v31 = vpop.f32.mrf.mxu1 }
 0x22b   :  { %v694_v63 = vadd.f32 %v722_v30, %v693_v31 }
 0x22d   :  { %v696_v32 = vmax.f32 %v694_v63, 0.0 }
 0x22f   :  { %697 = vst.msk [vmem:[#allocation3] sm:$0xff] %vm637_vm8, %v696_v32 }
 0x230   :  { %708 = dma.vmem_to_hbm [thread:$0]  %s704_s7, 128, %s706_s3, [#allocation4]  }
 0x231   :  { %747 = dma.done.wait [#allocation4], 128  }
 0x232   :  { %748 = vsyncadd [#allocation4], 4294967168 }
 0x233   :  { %713 = vsyncpa [#allocation4], 1 }

</bundles_post_ra>
